<compile_context>
chip_gen: v7x
topology: tpu7x:2x2x1
jax: 0.10.0
libtpu: 0.0.40
codegen_flags: <defaults>
</compile_context>

<pallas_src>
import functools

import jax
import jax.numpy as jnp
import numpy as np
from jax import lax
from jax.experimental import pallas as pl
from jax.experimental.pallas import tpu as pltpu


def agner_kernel(seq_ref, spanw_ref, w1_ref, b1_ref, w2_ref, b2_ref,
                 wlr_ref, blr_ref, logits_ref, bound_ref):
    """One batch element per grid step.

    seq_ref:    (1, S, H)      bf16 BERT last_hidden_state slab for batch b
    spanw_ref:  (N_pad, S)     bf16 span mean-pooling weights (resident)
    w1/b1:      (H, H) bf16, (1, H) f32       entity_classifier layer 0
    w2/b2:      (H, C_pad) bf16, (1, C_pad) f32   entity_classifier layer 2
    wlr/blr:    (2, H) bf16, (2, 1) f32       fused left/right boundary heads
    outputs:    logits (1, N_pad, C_pad) f32, bounds (1, 2, S) f32
    """
    seq_b = seq_ref[0]                                  # (S, H) bf16

    # Fused boundary heads, lane-dense: (2, H) . (S, H)^T -> (2, S), f32 acc.
    bound = lax.dot_general(
        wlr_ref[...], seq_b, (((1,), (1,)), ((), ())),
        preferred_element_type=jnp.float32)
    bound_ref[0] = bound + blr_ref[...]                 # (2, 1) bias broadcast

    # Span mean pooling as MXU matmul: (N_pad, S) @ (S, H) -> (N_pad, H).
    emb = jnp.dot(spanw_ref[...], seq_b, preferred_element_type=jnp.float32)

    # entity_classifier: Linear -> ReLU -> Linear (bf16 matmuls, f32 epilogue).
    h = jnp.maximum(
        jnp.dot(emb.astype(w1_ref.dtype), w1_ref[...],
                preferred_element_type=jnp.float32) + b1_ref[...], 0.0)
    logits_ref[0] = (
        jnp.dot(h.astype(w2_ref.dtype), w2_ref[...],
                preferred_element_type=jnp.float32) + b2_ref[...])


def _round_up(x, m):
    return (x + m - 1) // m * m


@functools.partial(jax.jit, static_argnames=("entity_type_count",))
def agner_train_step(sequence_output, entity_spans, params, *, entity_type_count):
    """Glue: build span weights / padded+fused weights, call the Pallas kernel."""
    B, S, H = sequence_output.shape
    N = entity_spans.shape[0]
    C = entity_type_count
    N_pad = _round_up(max(N, 1), 8)      # sublane multiple
    C_pad = _round_up(max(C, 1), 128)    # lane-dense logits

    # span mean weights: spanw[n, s] = 1/(end-start+1) if start <= s <= end.
    starts = entity_spans[:, 0]
    ends = entity_spans[:, 1]
    pos = jnp.arange(S)
    inside = (pos[None, :] >= starts[:, None]) & (pos[None, :] <= ends[:, None])
    counts = (ends - starts + 1).astype(jnp.float32)
    spanw = inside.astype(jnp.float32) / counts[:, None]                 # (N, S)
    spanw = jnp.pad(spanw, ((0, N_pad - N), (0, 0))).astype(jnp.bfloat16)

    w1, b1, w2, b2, wl, bl, wr, br = params

    # bf16 matmul operands; biases stay f32. Pad classifier output to C_pad.
    seq_bf = sequence_output.astype(jnp.bfloat16)
    w1_bf = w1.astype(jnp.bfloat16)
    w2_bf = jnp.pad(w2, ((0, 0), (0, C_pad - C))).astype(jnp.bfloat16)   # (H, C_pad)
    b2_p = jnp.pad(b2, ((0, 0), (0, C_pad - C)))                          # (1, C_pad)
    # Fuse left/right boundary heads: weights (2, H), bias (2, 1).
    wlr_t = jnp.concatenate([wl, wr], axis=1).T.astype(jnp.bfloat16)      # (2, H)
    blr = jnp.concatenate([bl, br], axis=0)                               # (2, 1)

    flops = 2 * B * (N_pad * S * H + N_pad * H * H + N_pad * H * C_pad + 2 * S * H)
    bytes_accessed = (
        B * S * H * 2                                     # sequence_output (bf16)
        + (N_pad * S + H * H + H * C_pad + 2 * H) * 2     # bf16 weights
        + (H + C_pad + 2) * 4                             # f32 biases
        + (B * N_pad * C_pad + B * 2 * S) * 4)            # f32 outputs

    logits_pad, bounds = pl.pallas_call(
        agner_kernel,
        out_shape=(
            jax.ShapeDtypeStruct((B, N_pad, C_pad), jnp.float32),
            jax.ShapeDtypeStruct((B, 2, S), jnp.float32),
        ),
        grid_spec=pltpu.PrefetchScalarGridSpec(
            num_scalar_prefetch=0,
            grid=(B,),
            in_specs=[
                pl.BlockSpec((1, S, H), lambda b: (b, 0, 0)),     # sequence_output
                pl.BlockSpec((N_pad, S), lambda b: (0, 0)),       # spanw (resident)
                pl.BlockSpec((H, H), lambda b: (0, 0)),           # w1
                pl.BlockSpec((1, H), lambda b: (0, 0)),           # b1
                pl.BlockSpec((H, C_pad), lambda b: (0, 0)),       # w2 (padded)
                pl.BlockSpec((1, C_pad), lambda b: (0, 0)),       # b2 (padded)
                pl.BlockSpec((2, H), lambda b: (0, 0)),           # fused wl/wr
                pl.BlockSpec((2, 1), lambda b: (0, 0)),           # fused bl/br
            ],
            out_specs=[
                pl.BlockSpec((1, N_pad, C_pad), lambda b: (b, 0, 0)),
                pl.BlockSpec((1, 2, S), lambda b: (b, 0, 0)),
            ],
        ),
        compiler_params=pltpu.CompilerParams(
            dimension_semantics=("parallel",)),
        cost_estimate=pl.CostEstimate(
            flops=flops, transcendentals=0, bytes_accessed=bytes_accessed),
    )(seq_bf, spanw, w1_bf, b1, w2_bf, b2_p, wlr_t, blr)

    # Back to the module's output layout.
    entity_logits = jnp.transpose(logits_pad[:, :N, :C], (1, 0, 2))   # (N, B, C)
    left_boundaries = bounds[:, 0, :, None]                            # (B, S, 1)
    right_boundaries = bounds[:, 1, :, None]                           # (B, S, 1)
    return entity_logits, left_boundaries, right_boundaries


def make_params(key, hidden, entity_type_count):
    ks = jax.random.split(key, 8)
    scale = 0.02
    w1 = scale * jax.random.normal(ks[0], (hidden, hidden), jnp.float32)
    b1 = scale * jax.random.normal(ks[1], (1, hidden), jnp.float32)
    w2 = scale * jax.random.normal(ks[2], (hidden, entity_type_count), jnp.float32)
    b2 = scale * jax.random.normal(ks[3], (1, entity_type_count), jnp.float32)
    wl = scale * jax.random.normal(ks[4], (hidden, 1), jnp.float32)
    bl = scale * jax.random.normal(ks[5], (1, 1), jnp.float32)
    wr = scale * jax.random.normal(ks[6], (hidden, 1), jnp.float32)
    br = scale * jax.random.normal(ks[7], (1, 1), jnp.float32)
    return (w1, b1, w2, b2, wl, bl, wr, br)


def reference_train_step(sequence_output, entity_spans, params, entity_type_count):
    """Pure-JAX (f32) mirror of the PyTorch train_step for correctness check."""
    w1, b1, w2, b2, wl, bl, wr, br = params
    embs = []
    for n in range(entity_spans.shape[0]):
        s, e = int(entity_spans[n, 0]), int(entity_spans[n, 1])
        embs.append(jnp.mean(sequence_output[:, s:e + 1, :], axis=1))  # (B, H)
    emb = jnp.stack(embs, axis=0)                                      # (N, B, H)
    h = jax.nn.relu(emb @ w1 + b1)
    logits = h @ w2 + b2
    left = sequence_output @ wl + bl
    right = sequence_output @ wr + br
    return logits, left, right


if __name__ == "__main__":
    B, S, H = 2, 16, 32          # batch, seq len, hidden_size
    ENTITY_TYPES = 5             # entity_type_count

    key = jax.random.PRNGKey(0)
    k_seq, k_params = jax.random.split(key)

    # "sequence_output" stands in for BertModel(...).last_hidden_state
    sequence_output = jax.random.normal(k_seq, (B, S, H), jnp.float32)
    entity_spans = jnp.array([[1, 3], [5, 5], [8, 12]], dtype=jnp.int32)  # (N, 2)
    params = make_params(k_params, H, ENTITY_TYPES)

    logits, left, right = agner_train_step(
        sequence_output, entity_spans, params, entity_type_count=ENTITY_TYPES)
    jax.block_until_ready((logits, left, right))

    ref_logits, ref_left, ref_right = reference_train_step(
        np.asarray(sequence_output), np.asarray(entity_spans), params, ENTITY_TYPES)

    # bf16 matmul operands (f32 accumulation) vs f32 reference -> looser tol.
    np.testing.assert_allclose(np.asarray(logits), np.asarray(ref_logits),
                               rtol=2e-2, atol=5e-3)
    np.testing.assert_allclose(np.asarray(left), np.asarray(ref_left),
                               rtol=2e-2, atol=5e-3)
    np.testing.assert_allclose(np.asarray(right), np.asarray(ref_right),
                               rtol=2e-2, atol=5e-3)

    print("KERNEL_OK")
</pallas_src>

<mosaic_0001>
module attributes {stable_mosaic.version = 11 : i64} {
  func.func @agner_kernel(%arg0: i32, %arg1: memref<1x16x32xbf16, #tpu.memory_space<vmem>>, %arg2: memref<8x16xbf16, #tpu.memory_space<vmem>>, %arg3: memref<32x32xbf16, #tpu.memory_space<vmem>>, %arg4: memref<1x32xf32, #tpu.memory_space<vmem>>, %arg5: memref<32x128xbf16, #tpu.memory_space<vmem>>, %arg6: memref<1x128xf32, #tpu.memory_space<vmem>>, %arg7: memref<2x32xbf16, #tpu.memory_space<vmem>>, %arg8: memref<2x1xf32, #tpu.memory_space<vmem>>, %arg9: memref<1x8x128xf32, #tpu.memory_space<vmem>>, %arg10: memref<1x2x16xf32, #tpu.memory_space<vmem>>) attributes {dimension_semantics = [#tpu.dimension_semantics<parallel>], iteration_bounds = array<i64: 2>, scalar_prefetch = 0 : i64, scratch_operands = 0 : i64, tpu.core_type = #tpu.core_type<tc>, window_params = [{transform_indices = @transform_0, window_bounds = array<i64: 1, 16, 32>}, {pipeline_mode = #tpu.pipeline_mode<synchronous>, transform_indices = @transform_1, window_bounds = array<i64: 8, 16>}, {pipeline_mode = #tpu.pipeline_mode<synchronous>, transform_indices = @transform_2, window_bounds = array<i64: 32, 32>}, {pipeline_mode = #tpu.pipeline_mode<synchronous>, transform_indices = @transform_3, window_bounds = array<i64: 1, 32>}, {pipeline_mode = #tpu.pipeline_mode<synchronous>, transform_indices = @transform_4, window_bounds = array<i64: 32, 128>}, {pipeline_mode = #tpu.pipeline_mode<synchronous>, transform_indices = @transform_5, window_bounds = array<i64: 1, 128>}, {pipeline_mode = #tpu.pipeline_mode<synchronous>, transform_indices = @transform_6, window_bounds = array<i64: 2, 32>}, {pipeline_mode = #tpu.pipeline_mode<synchronous>, transform_indices = @transform_7, window_bounds = array<i64: 2, 1>}, {transform_indices = @transform_8, window_bounds = array<i64: 1, 8, 128>}, {transform_indices = @transform_9, window_bounds = array<i64: 1, 2, 16>}]} {
    %c0 = arith.constant 0 : index
    %c0_0 = arith.constant 0 : index
    %c0_1 = arith.constant 0 : index
    %0 = vector.load %arg1[%c0, %c0_0, %c0_1] : memref<1x16x32xbf16, #tpu.memory_space<vmem>>, vector<1x16x32xbf16>
    %1 = vector.shape_cast %0 : vector<1x16x32xbf16> to vector<16x32xbf16>
    %c0_2 = arith.constant 0 : index
    %c0_3 = arith.constant 0 : index
    %2 = vector.load %arg7[%c0_2, %c0_3] : memref<2x32xbf16, #tpu.memory_space<vmem>>, vector<2x32xbf16>
    %cst = arith.constant dense<0.000000e+00> : vector<2x16xf32>
    %3 = tpu.matmul %2, %1, %cst {dimension_numbers = #tpu.dot_dimension_numbers<[1], [1], [0], [0], [0, 0, 1, 0], [], []>} : vector<2x32xbf16>, vector<16x32xbf16>, vector<2x16xf32> -> vector<2x16xf32>
    %c0_4 = arith.constant 0 : index
    %c0_5 = arith.constant 0 : index
    %4 = vector.load %arg8[%c0_4, %c0_5] : memref<2x1xf32, #tpu.memory_space<vmem>>, vector<2x1xf32>
    %5 = vector.broadcast %4 : vector<2x1xf32> to vector<2x16xf32>
    %6 = arith.addf %3, %5 : vector<2x16xf32>
    %c0_6 = arith.constant 0 : index
    %c0_7 = arith.constant 0 : index
    %c0_8 = arith.constant 0 : index
    %7 = vector.load %arg10[%c0_6, %c0_7, %c0_8] : memref<1x2x16xf32, #tpu.memory_space<vmem>>, vector<1x2x16xf32>
    %8 = vector.shape_cast %7 : vector<1x2x16xf32> to vector<2x16xf32>
    %9 = vector.shape_cast %6 : vector<2x16xf32> to vector<1x2x16xf32>
    tpu.vector_store %arg10[%c0_6, %c0_7, %c0_8], %9 {strides = array<i32>} : memref<1x2x16xf32, #tpu.memory_space<vmem>>, vector<1x2x16xf32>,
    %c0_9 = arith.constant 0 : index
    %c0_10 = arith.constant 0 : index
    %10 = vector.load %arg2[%c0_9, %c0_10] : memref<8x16xbf16, #tpu.memory_space<vmem>>, vector<8x16xbf16>
    %cst_11 = arith.constant dense<0.000000e+00> : vector<8x32xf32>
    %11 = tpu.matmul %10, %1, %cst_11 {dimension_numbers = #tpu.dot_dimension_numbers<[1], [0], [0], [1], [0, 0, 1, 1], [], []>} : vector<8x16xbf16>, vector<16x32xbf16>, vector<8x32xf32> -> vector<8x32xf32>
    %12 = arith.truncf %11 : vector<8x32xf32> to vector<8x32xbf16>
    %c0_12 = arith.constant 0 : index
    %c0_13 = arith.constant 0 : index
    %13 = vector.load %arg3[%c0_12, %c0_13] : memref<32x32xbf16, #tpu.memory_space<vmem>>, vector<32x32xbf16>
    %cst_14 = arith.constant dense<0.000000e+00> : vector<8x32xf32>
    %14 = tpu.matmul %12, %13, %cst_14 {dimension_numbers = #tpu.dot_dimension_numbers<[1], [0], [0], [1], [0, 0, 1, 1], [], []>} : vector<8x32xbf16>, vector<32x32xbf16>, vector<8x32xf32> -> vector<8x32xf32>
    %c0_15 = arith.constant 0 : index
    %c0_16 = arith.constant 0 : index
    %15 = vector.load %arg4[%c0_15, %c0_16] : memref<1x32xf32, #tpu.memory_space<vmem>>, vector<1x32xf32>
    %16 = vector.broadcast %15 : vector<1x32xf32> to vector<8x32xf32>
    %17 = arith.addf %14, %16 : vector<8x32xf32>
    %cst_17 = arith.constant 0.000000e+00 : f32
    %18 = vector.broadcast %cst_17 : f32 to vector<8x32xf32>
    %19 = arith.maximumf %17, %18 : vector<8x32xf32>
    %20 = arith.truncf %19 : vector<8x32xf32> to vector<8x32xbf16>
    %c0_18 = arith.constant 0 : index
    %c0_19 = arith.constant 0 : index
    %21 = vector.load %arg5[%c0_18, %c0_19] : memref<32x128xbf16, #tpu.memory_space<vmem>>, vector<32x128xbf16>
    %cst_20 = arith.constant dense<0.000000e+00> : vector<8x128xf32>
    %22 = tpu.matmul %20, %21, %cst_20 {dimension_numbers = #tpu.dot_dimension_numbers<[1], [0], [0], [1], [0, 0, 1, 1], [], []>} : vector<8x32xbf16>, vector<32x128xbf16>, vector<8x128xf32> -> vector<8x128xf32>
    %c0_21 = arith.constant 0 : index
    %c0_22 = arith.constant 0 : index
    %23 = vector.load %arg6[%c0_21, %c0_22] : memref<1x128xf32, #tpu.memory_space<vmem>>, vector<1x128xf32>
    %24 = vector.broadcast %23 : vector<1x128xf32> to vector<8x128xf32>
    %25 = arith.addf %22, %24 : vector<8x128xf32>
    %c0_23 = arith.constant 0 : index
    %c0_24 = arith.constant 0 : index
    %c0_25 = arith.constant 0 : index
    %26 = vector.load %arg9[%c0_23, %c0_24, %c0_25] : memref<1x8x128xf32, #tpu.memory_space<vmem>>, vector<1x8x128xf32>
    %27 = vector.shape_cast %26 : vector<1x8x128xf32> to vector<8x128xf32>
    %28 = vector.shape_cast %25 : vector<8x128xf32> to vector<1x8x128xf32>
    tpu.vector_store %arg9[%c0_23, %c0_24, %c0_25], %28 {strides = array<i32>} : memref<1x8x128xf32, #tpu.memory_space<vmem>>, vector<1x8x128xf32>,
    return
  }
  func.func @transform_0(%arg0: i32) -> (i32, i32, i32) {
    %c0_i32 = arith.constant 0 : i32
    %c0_i32_0 = arith.constant 0 : i32
    %c0_i32_1 = arith.constant 0 : i32
    return %arg0, %c0_i32, %c0_i32_0 : i32, i32, i32
  }
  func.func @transform_1(%arg0: i32) -> (i32, i32) {
    %c0_i32 = arith.constant 0 : i32
    %c0_i32_0 = arith.constant 0 : i32
    %c0_i32_1 = arith.constant 0 : i32
    return %c0_i32, %c0_i32_0 : i32, i32
  }
  func.func @transform_2(%arg0: i32) -> (i32, i32) {
    %c0_i32 = arith.constant 0 : i32
    %c0_i32_0 = arith.constant 0 : i32
    %c0_i32_1 = arith.constant 0 : i32
    return %c0_i32, %c0_i32_0 : i32, i32
  }
  func.func @transform_3(%arg0: i32) -> (i32, i32) {
    %c0_i32 = arith.constant 0 : i32
    %c0_i32_0 = arith.constant 0 : i32
    %c0_i32_1 = arith.constant 0 : i32
    return %c0_i32, %c0_i32_0 : i32, i32
  }
  func.func @transform_4(%arg0: i32) -> (i32, i32) {
    %c0_i32 = arith.constant 0 : i32
    %c0_i32_0 = arith.constant 0 : i32
    %c0_i32_1 = arith.constant 0 : i32
    return %c0_i32, %c0_i32_0 : i32, i32
  }
  func.func @transform_5(%arg0: i32) -> (i32, i32) {
    %c0_i32 = arith.constant 0 : i32
    %c0_i32_0 = arith.constant 0 : i32
    %c0_i32_1 = arith.constant 0 : i32
    return %c0_i32, %c0_i32_0 : i32, i32
  }
  func.func @transform_6(%arg0: i32) -> (i32, i32) {
    %c0_i32 = arith.constant 0 : i32
    %c0_i32_0 = arith.constant 0 : i32
    %c0_i32_1 = arith.constant 0 : i32
    return %c0_i32, %c0_i32_0 : i32, i32
  }
  func.func @transform_7(%arg0: i32) -> (i32, i32) {
    %c0_i32 = arith.constant 0 : i32
    %c0_i32_0 = arith.constant 0 : i32
    %c0_i32_1 = arith.constant 0 : i32
    return %c0_i32, %c0_i32_0 : i32, i32
  }
  func.func @transform_8(%arg0: i32) -> (i32, i32, i32) {
    %c0_i32 = arith.constant 0 : i32
    %c0_i32_0 = arith.constant 0 : i32
    %c0_i32_1 = arith.constant 0 : i32
    return %arg0, %c0_i32, %c0_i32_0 : i32, i32, i32
  }
  func.func @transform_9(%arg0: i32) -> (i32, i32, i32) {
    %c0_i32 = arith.constant 0 : i32
    %c0_i32_0 = arith.constant 0 : i32
    %c0_i32_1 = arith.constant 0 : i32
    return %arg0, %c0_i32, %c0_i32_0 : i32, i32, i32
  }
}

</mosaic_0001>

<bundles_post_ra>
// kernel: agner_train_step.1
= control target key start
LH: loop header
LB: loop body
LE: loop exit
PB: predicated region body
PF: predicated region fallthrough
CT: control target
= control target key end

     0   :  { %s811_s30 = smov 0   ;;  %s874_s0 = inlined_call_operand.vmem [shape: bf16[2,16,32], index: 0, kind: input, shape index: {}]   ;;  %s875_s1 = inlined_call_operand.vmem [shape: bf16[8,16], index: 1, kind: input, shape index: {}]   ;;  %s876_s2 = inlined_call_operand.vmem [shape: bf16[32,32], index: 2, kind: input, shape index: {}]   ;;  %s877_s3 = inlined_call_operand.vmem [shape: f32[1,32], index: 3, kind: input, shape index: {}]   ;;  %s878_s4 = inlined_call_operand.vmem [shape: bf16[32,128], index: 4, kind: input, shape index: {}]   ;;  %s879_s5 = inlined_call_operand.vmem [shape: f32[1,128], index: 5, kind: input, shape index: {}]   ;;  %s880_s6 = inlined_call_operand.vmem [shape: bf16[2,32], index: 6, kind: input, shape index: {}]   ;;  %s881_s7 = inlined_call_operand.vmem [shape: f32[2,1], index: 7, kind: input, shape index: {}]   ;;  %s882_s8 = inlined_call_operand.vmem [shape: f32[2,8,128], index: 8, kind: output, shape index: {0}]   ;;  %s883_s9 = inlined_call_operand.vmem [shape: f32[2,2,16], index: 9, kind: output, shape index: {1}]  }
   0x1 LB: > { %s672_s10 = sadd.s32 4294967295, %s756_s30   ;;  %p676_p0 = scmp.ge.s32.totalorder %s756_s30, 1  ;;  %s756_s30 = sphi %s811_s30, %s20_s30  }
   0x2   : > { %p290_p1 = scmp.lt.s32.totalorder %s756_s30, 3 }
   0x4   : > { %p291_p2 = pnand %p676_p0, %p290_p1 }
   0x5   : > { %p329_p3 = scmp.lt.s32.totalorder (!%p291_p2), %s672_s10, 1  ;;  %v758_v0 = vmov (!%p291_p2), 0.0   ;;  %vm759_vm0 = vmmov (!%p291_p2), 0   ;;  %v406_v2 = vld [vmem:[%s875_s1] sm:$0xf] (!%p291_p2)  ;;  %vm408_vm1 = vcmask (!%p291_p2), 130048  }
   0x6   : > { %294 = sbr.rel (%p291_p2) target bundleno = 667 (0x29b), region = 52  ;;  %711 = vmatprep.subr.bf16.mxu1 (!%p291_p2), %v758_v0  ;;  %713 = vmatprep.mubr.msk.bf16.mxu1 (!%p291_p2), %vm759_vm0, %v758_v0  ;;  %v746_v3 = vld [vmem:[%s876_s2] sm:$0xff] (!%p291_p2)   ;;  %v747_v4 = vld [vmem:[%s876_s2 + $0x8] sm:$0xff] (!%p291_p2)   ;;  %vm357_vm2 = vcmask (!%p291_p2), 261120   ;;  %v760_v15 = vmov (!%p291_p2), 0   ;;  %vm404_vm3 = vcmask (!%p291_p2), 123904  }
   0x7   : > { %705 = vmatprep.subr.bf16.mxu0 (!%p291_p2), %v758_v0  ;;  %707 = vmatprep.mubr.msk.bf16.mxu0 (!%p291_p2), %vm759_vm0, %v758_v0  ;;  %v345_v6 = vld [vmem:[%s880_s6] sm:$0x1] (!%p291_p2)  ;;  %v749_v13 = vld [vmem:[%s878_s4 + $0x8] sm:$0xff] (!%p291_p2)  }
   0x8   : > { %v748_v7 = vld [vmem:[%s878_s4] sm:$0xff] (!%p291_p2)   ;;  %744 = vset.pattern.permute.xlu0 (!%p291_p2), %v760_v15 }
   0x9   : > { %v346_v14 = vld [vmem:[%s881_s7] sm:$0x3] (!%p291_p2) }
   0xa   : > { %349 = vperm.xlu0 (!%p291_p2), %744, %v346_v14   ;;  %v684_v20 = vld [vmem:[%s877_s3] ss:$0 sm:$0xff] (!%p291_p2) }
   0xb   : > { %v688_v30 = vld [vmem:[%s879_s5] ss:$0 sm:$0xff] (!%p291_p2) }
   0xd   : > { %s885_s10 = smov (!%p329_p3, %s672_s10), 1 }
   0xe   : > { %s694_s11 = sshll.u32 %s885_s10, 3  ;;  %s680_s13 = sshll.u32 %s885_s10, 1 }
   0xf   : > { %s333_s14 = scalar_lea.vmem %s874_s0, %s694_s11  ;;  %s341_s16 = scalar_lea.vmem %s883_s9, %s680_s13 }
  0x10   : > { %v745_v1 = vld [vmem:[%s333_s14] sm:$0xff]   ;;  %s337_s21 = scalar_lea.vmem %s882_s8, %s694_s11 }
  0x11   : > { %712 = vmatpush3.bf16.msra.mxu1 %v745_v1  ;;  %v362_v5 = vsel %vm357_vm2, %v745_v1, 0 }
  0x12   : > { %717 = vmatprep.subr.bf16.mxu1 %v758_v0  ;;  %706 = vmatpush3.bf16.xpose.msra.mxu0 %v362_v5 }
  0x13   : > { %725 = vmatprep.subr.bf16.mxu0 %v758_v0 }
  0x14   : > { %714 = vmatmul.mubr.msk.bf16.vlgmr.msra.gmra.mrb[0].mxu1 %vm408_vm1, %v406_v2 }
  0x15   : > { %718 = vmatpush3.bf16.msra.mxu1 %v746_v3  ;;  %721 = vmatprep.mubr.msk.bf16.mxu1 %vm759_vm0, %v758_v0 }
  0x16   : > { %719 = vmatprep.subr.bf16.mxu1 %v758_v0 }
  0x19   : > { %720 = vmatpush3.bf16.msra.mxu1 %v747_v4  ;;  %708 = vmatmul.mubr.msk.bf16.vlgmr.msra.gmra.mrb[0].mxu0 %vm357_vm2, %v345_v6 }
  0x1a   : > { %726 = vmatpush3.bf16.msra.mxu0 %v748_v7  ;;  %729 = vmatprep.mubr.msk.bf16.mxu0 %vm759_vm0, %v758_v0 }
  0x1b   : > { %727 = vmatprep.subr.bf16.mxu0 %v758_v0 }
  0x1e   : > { %728 = vmatpush3.bf16.msra.mxu0 %v749_v13 }
  0x89   : > { %v350_v28 = vpop.permute.xlu0 %349 }
  0xe7   : > { %v446_v8 = vpop.f32.mrb[0].mxu1 }
  0xe8   : > { %v452_v9 = vpack.c.bf16 %v446_v8, %v446_v8  ;;  %v715_v10 = vpop.f32.mrb[1].mxu1 }
  0xe9   : > { %v449_v11 = vpop.f32.mrb[2].mxu1 }
  0xea   : > { %v716_v12 = vpop.f32.mrb[3].mxu1  ;;  %722 = vmatmul.mubr.msk.bf16.vlgmr.msra.gmra.mrb[4].mxu1 %vm357_vm2, %v452_v9 }
  0xec   : > { %v398_v16 = vpop.f32.mrb[0].mxu0 }
  0xed   : > { %v709_v17 = vpop.f32.mrb[1].mxu0  ;;  %v399_v29 = vadd.f32 %v398_v16, %v350_v28 }
  0xee   : > { %v401_v18 = vpop.f32.mrb[2].mxu0 }
  0xef   : > { %v710_v19 = vpop.f32.mrb[3].mxu0  ;;  %405 = vst.msk [vmem:[%s341_s16] sm:$0x3] %vm404_vm3, %v399_v29 }
 0x1bd   : > { %v513_v21 = vpop.f32.mrb[4].mxu1 }
 0x1be   : > { %v514_v22 = vadd.f32 %v684_v20, %v513_v21  ;;  %v723_v23 = vpop.f32.mrb[5].mxu1 }
 0x1bf   : > { %v516_v24 = vpop.f32.mrb[6].mxu1 }
 0x1c0   : > { %v519_v25 = vmax.f32 %v514_v22, 0.0  ;;  %v724_v26 = vpop.f32.mrb[7].mxu1 }
 0x1c2   : > { %v520_v27 = vpack.c.bf16 %v519_v25, %v519_v25 }
 0x1c4   : > { %730 = vmatmul.mubr.msk.bf16.vlgmr.msra.gmra.mrb[4].mxu0 %vm357_vm2, %v520_v27 }
 0x297   : > { %v581_v31 = vpop.f32.mrb[4].mxu0 }
 0x298   : > { %v582_v32 = vadd.f32 %v688_v30, %v581_v31  ;;  %v731_v33 = vpop.f32.mrb[5].mxu0 }
 0x299   : > { %v584_v34 = vpop.f32.mrb[6].mxu0 }
 0x29a   : > { %587 = vst [vmem:[%s337_s21] sm:$0xff] %v582_v32  ;;  %v732_v35 = vpop.f32.mrb[7].mxu0 }
 0x29b PF: > { %s20_s30 = sadd.s32 1, %s756_s30  }
 0x29c   : > { %p17_p4 = scmp.ge.s32.totalorder %s20_s30, 4  }
 0x29e   :  { %19 = sbr.rel (!%p17_p4) target bundleno = 1 (0x1), region = 94 }

</bundles_post_ra>
